<compile_context>
chip_gen: v7x
topology: tpu7x:2x2x1
jax: 0.10.0
libtpu: 0.0.40
codegen_flags: <defaults>
</compile_context>

<pallas_src>
import jax
import jax.numpy as jnp
from jax.experimental import pallas as pl
from jax.experimental.pallas import tpu as pltpu

LN_EPS = 1e-6


def norm2d_kernel(x_ref, w_ref, b_ref, o_ref):
    """x_ref/o_ref: (1, C, T) NCHW-layout tile; w_ref/b_ref: (C, 1) affine."""
    x = x_ref[0].astype(jnp.float32)                     # (C, T)
    inv_c = jnp.float32(1.0 / x.shape[0])
    mu = jnp.sum(x, axis=0, keepdims=True) * inv_c       # (1, T) per-pixel mean over C
    xc = x - mu
    var = jnp.sum(xc * xc, axis=0, keepdims=True) * inv_c  # biased var (nn.LayerNorm)
    inv = jax.lax.rsqrt(var + jnp.float32(LN_EPS))       # EUP rsqrt
    y = xc * inv * w_ref[...] + b_ref[...]               # per-channel affine (lane broadcast)
    o_ref[0] = y.astype(o_ref.dtype)


def _pick_tile(hw, c, itemsize):
    """Largest lane-dense spatial tile (multiple of 128) dividing H*W that keeps
    the double-buffered input+output tiles within the default VMEM budget."""
    budget = 24 * 1024 * 1024
    per_elem = max(int(itemsize), 4)          # kernel upcasts to f32 internally
    for t in (4096, 2048, 1024, 512, 256, 128):
        if hw % t == 0 and 4 * c * t * per_elem <= budget:
            return t
    return hw                                  # non-multiple of 128: full-extent block


def _norm2d(x, weight, bias):
    B, C, H, W = x.shape
    HW = H * W
    tile = _pick_tile(HW, C, jnp.dtype(x.dtype).itemsize)
    xf = x.reshape(B, C, HW)                   # free metadata reshape, no HBM traffic
    w2 = weight.reshape(C, 1).astype(jnp.float32)
    b2 = bias.reshape(C, 1).astype(jnp.float32)

    out = pl.pallas_call(
        norm2d_kernel,
        grid=(B, HW // tile),
        in_specs=[
            pl.BlockSpec((1, C, tile), lambda b, j: (b, 0, j)),
            pl.BlockSpec((C, 1), lambda b, j: (0, 0)),
            pl.BlockSpec((C, 1), lambda b, j: (0, 0)),
        ],
        out_specs=pl.BlockSpec((1, C, tile), lambda b, j: (b, 0, j)),
        out_shape=jax.ShapeDtypeStruct((B, C, HW), x.dtype),
        compiler_params=pltpu.CompilerParams(
            dimension_semantics=("parallel", "parallel")),
    )(xf, w2, b2)
    return out.reshape(B, C, H, W)


norm2d = jax.jit(_norm2d)


def reference_norm2d(x, weight, bias):
    """Pure-JAX reproduction of the PyTorch Norm2d.forward semantics."""
    xt = jnp.transpose(x, (0, 2, 3, 1)).astype(jnp.float32)   # b c h w -> b h w c
    mu = jnp.mean(xt, axis=-1, keepdims=True)
    var = jnp.mean((xt - mu) ** 2, axis=-1, keepdims=True)    # biased var, as nn.LayerNorm
    y = (xt - mu) / jnp.sqrt(var + LN_EPS) * weight + bias
    return jnp.transpose(y, (0, 3, 1, 2)).astype(x.dtype)     # b h w c -> b c h w


if __name__ == "__main__":
    B, C, H, W = 2, 32, 16, 16
    key = jax.random.PRNGKey(0)
    kx, kw, kb = jax.random.split(key, 3)
    x = jax.random.normal(kx, (B, C, H, W), jnp.float32)
    weight = 1.0 + 0.1 * jax.random.normal(kw, (C,), jnp.float32)
    bias = 0.1 * jax.random.normal(kb, (C,), jnp.float32)

    out = jax.block_until_ready(norm2d(x, weight, bias))

    ref = reference_norm2d(x, weight, bias)
    assert out.shape == (B, C, H, W)
    if not bool(jnp.allclose(out, ref, atol=1e-5, rtol=1e-5)):
        raise AssertionError(
            f"Pallas/reference mismatch, max abs err = {float(jnp.max(jnp.abs(out - ref)))}")
    print("KERNEL_OK")
</pallas_src>

<mosaic_0001>
module attributes {stable_mosaic.version = 11 : i64} {
  func.func @norm2d_kernel(%arg0: i32, %arg1: i32, %arg2: memref<1x32x256xf32, #tpu.memory_space<vmem>>, %arg3: memref<32x1xf32, #tpu.memory_space<vmem>>, %arg4: memref<32x1xf32, #tpu.memory_space<vmem>>, %arg5: memref<1x32x256xf32, #tpu.memory_space<vmem>>) attributes {dimension_semantics = [#tpu.dimension_semantics<parallel>, #tpu.dimension_semantics<parallel>], iteration_bounds = array<i64: 2, 1>, scalar_prefetch = 0 : i64, scratch_operands = 0 : i64, tpu.core_type = #tpu.core_type<tc>, window_params = [{transform_indices = @transform_0, window_bounds = array<i64: 1, 32, 256>}, {pipeline_mode = #tpu.pipeline_mode<synchronous>, transform_indices = @transform_1, window_bounds = array<i64: 32, 1>}, {pipeline_mode = #tpu.pipeline_mode<synchronous>, transform_indices = @transform_2, window_bounds = array<i64: 32, 1>}, {transform_indices = @transform_3, window_bounds = array<i64: 1, 32, 256>}]} {
    %c0 = arith.constant 0 : index
    %c0_0 = arith.constant 0 : index
    %c0_1 = arith.constant 0 : index
    %0 = vector.load %arg2[%c0, %c0_0, %c0_1] : memref<1x32x256xf32, #tpu.memory_space<vmem>>, vector<1x32x256xf32>
    %1 = vector.shape_cast %0 : vector<1x32x256xf32> to vector<32x256xf32>
    %cst = arith.constant dense<0.000000e+00> : vector<256xf32>
    %2 = vector.multi_reduction <add>, %1, %cst [0] : vector<32x256xf32> to vector<256xf32>
    %3 = vector.shape_cast %2 : vector<256xf32> to vector<1x256xf32>
    %cst_2 = arith.constant 3.125000e-02 : f32
    %4 = vector.broadcast %cst_2 : f32 to vector<1x256xf32>
    %5 = arith.mulf %3, %4 : vector<1x256xf32>
    %6 = vector.broadcast %5 : vector<1x256xf32> to vector<32x256xf32>
    %7 = arith.subf %1, %6 : vector<32x256xf32>
    %8 = arith.mulf %7, %7 : vector<32x256xf32>
    %cst_3 = arith.constant dense<0.000000e+00> : vector<256xf32>
    %9 = vector.multi_reduction <add>, %8, %cst_3 [0] : vector<32x256xf32> to vector<256xf32>
    %10 = vector.shape_cast %9 : vector<256xf32> to vector<1x256xf32>
    %cst_4 = arith.constant 3.125000e-02 : f32
    %11 = vector.broadcast %cst_4 : f32 to vector<1x256xf32>
    %12 = arith.mulf %10, %11 : vector<1x256xf32>
    %cst_5 = arith.constant 9.99999997E-7 : f32
    %13 = vector.broadcast %cst_5 : f32 to vector<1x256xf32>
    %14 = arith.addf %12, %13 : vector<1x256xf32>
    %15 = math.rsqrt %14 : vector<1x256xf32>
    %16 = vector.broadcast %15 : vector<1x256xf32> to vector<32x256xf32>
    %17 = arith.mulf %7, %16 : vector<32x256xf32>
    %c0_6 = arith.constant 0 : index
    %c0_7 = arith.constant 0 : index
    %18 = vector.load %arg3[%c0_6, %c0_7] : memref<32x1xf32, #tpu.memory_space<vmem>>, vector<32x1xf32>
    %19 = vector.broadcast %18 : vector<32x1xf32> to vector<32x256xf32>
    %20 = arith.mulf %17, %19 : vector<32x256xf32>
    %c0_8 = arith.constant 0 : index
    %c0_9 = arith.constant 0 : index
    %21 = vector.load %arg4[%c0_8, %c0_9] : memref<32x1xf32, #tpu.memory_space<vmem>>, vector<32x1xf32>
    %22 = vector.broadcast %21 : vector<32x1xf32> to vector<32x256xf32>
    %23 = arith.addf %20, %22 : vector<32x256xf32>
    %c0_10 = arith.constant 0 : index
    %c0_11 = arith.constant 0 : index
    %c0_12 = arith.constant 0 : index
    %24 = vector.load %arg5[%c0_10, %c0_11, %c0_12] : memref<1x32x256xf32, #tpu.memory_space<vmem>>, vector<1x32x256xf32>
    %25 = vector.shape_cast %24 : vector<1x32x256xf32> to vector<32x256xf32>
    %26 = vector.shape_cast %23 : vector<32x256xf32> to vector<1x32x256xf32>
    tpu.vector_store %arg5[%c0_10, %c0_11, %c0_12], %26 {strides = array<i32>} : memref<1x32x256xf32, #tpu.memory_space<vmem>>, vector<1x32x256xf32>,
    return
  }
  func.func @transform_0(%arg0: i32, %arg1: i32) -> (i32, i32, i32) {
    %c0_i32 = arith.constant 0 : i32
    %c0_i32_0 = arith.constant 0 : i32
    return %arg0, %c0_i32, %arg1 : i32, i32, i32
  }
  func.func @transform_1(%arg0: i32, %arg1: i32) -> (i32, i32) {
    %c0_i32 = arith.constant 0 : i32
    %c0_i32_0 = arith.constant 0 : i32
    %c0_i32_1 = arith.constant 0 : i32
    return %c0_i32, %c0_i32_0 : i32, i32
  }
  func.func @transform_2(%arg0: i32, %arg1: i32) -> (i32, i32) {
    %c0_i32 = arith.constant 0 : i32
    %c0_i32_0 = arith.constant 0 : i32
    %c0_i32_1 = arith.constant 0 : i32
    return %c0_i32, %c0_i32_0 : i32, i32
  }
  func.func @transform_3(%arg0: i32, %arg1: i32) -> (i32, i32, i32) {
    %c0_i32 = arith.constant 0 : i32
    %c0_i32_0 = arith.constant 0 : i32
    return %arg0, %c0_i32, %arg1 : i32, i32, i32
  }
}

</mosaic_0001>

<bundles_post_ra>
// kernel: _norm2d.1
= control target key start
LH: loop header
LB: loop body
LE: loop exit
PB: predicated region body
PF: predicated region fallthrough
CT: control target
= control target key end

     0   :  { %s534_s12 = smov 0   ;;  %s536_s13 = smov 0   ;;  %s598_s0 = inlined_call_operand.vmem [shape: f32[2,32,256], index: 0, kind: input, shape index: {}]   ;;  %s599_s1 = inlined_call_operand.vmem [shape: f32[32,1], index: 1, kind: input, shape index: {}]   ;;  %s600_s2 = inlined_call_operand.vmem [shape: f32[32,1], index: 2, kind: input, shape index: {}]   ;;  %s601_s3 = inlined_call_operand.vmem [shape: f32[2,32,256], index: 3, kind: output, shape index: {}]  }
   0x1   :  { %s538_s14 = smov 0  }
   0x2 LB: > { %s25_s15 = sadd.s32 1, %s507_s13  ;;  %p449_p0 = scmp.ge.s32.totalorder %s511_s14, 1  ;;  %s511_s14 = sphi %s538_s14, %s13_s14   ;;  %s507_s13 = sphi %s536_s13, %s603_s13   ;;  %s503_s12 = sphi %s534_s12, %s602_s12  }
   0x3   : > { %p27_p1 = scmp.ge.s32.totalorder %s25_s15, 2  ;;  %p158_p2 = scmp.lt.s32.totalorder %s511_s14, 3 }
   0x5   : > { %s605_s15 = smov (%p27_p1, %s25_s15), 0  ;;  %p159_p3 = pnand %p449_p0, %p158_p2 }
   0x6   : > { %v288_v0 = vld [vmem:[%s599_s1 + $0x10] sm:$0xff] (!%p159_p3)  ;;  %v286_v1 = vld [vmem:[%s599_s1] sm:$0xff] (!%p159_p3)  ;;  %v513_v2 = vmov (!%p159_p3), 0   ;;  %v289_v3 = vld [vmem:[%s599_s1 + $0x18] sm:$0xff] (!%p159_p3)  ;;  %p191_p4 = scmp.lt.s32.totalorder (!%p159_p3), %s503_s12, 1 }
   0x7   : > { %162 = sbr.rel (%p159_p3) target bundleno = 152 (0x98), region = 32  ;;  %484 = vset.pattern.permute.xlu1 (!%p159_p3), %v513_v2  ;;  %483 = vset.pattern.permute.xlu0 (!%p159_p3), %v513_v2  ;;  %v287_v4 = vld [vmem:[%s599_s1 + $0x8] sm:$0xff] (!%p159_p3)  ;;  %v318_v6 = vld [vmem:[%s600_s2] sm:$0xff] (!%p159_p3)  ;;  %v321_v7 = vld [vmem:[%s600_s2 + $0x18] sm:$0xff] (!%p159_p3) }
   0x8   : > { %302 = vperm.xlu1 (!%p159_p3), %484, %v288_v0   ;;  %292 = vperm.xlu0 (!%p159_p3), %483, %v286_v1   ;;  %v319_v5 = vld [vmem:[%s600_s2 + $0x8] sm:$0xff] (!%p159_p3)  ;;  %v320_v8 = vld [vmem:[%s600_s2 + $0x10] sm:$0xff] (!%p159_p3) }
   0xc   : > { %307 = vperm.xlu1 (!%p159_p3), %484, %v289_v3   ;;  %297 = vperm.xlu0 (!%p159_p3), %483, %v287_v4  }
   0xe   : > { %s607_s12 = smov (!%p191_p4, %s503_s12), 1 }
   0xf   : > { %s456_s5 = sshll.u32 %s607_s12, 6 }
  0x10   : > { %329 = vperm.xlu1 %484, %v319_v5   ;;  %324 = vperm.xlu0 %483, %v318_v6   ;;  %s198_s8 = scalar_lea.vmem %s598_s0, %s456_s5  ;;  %s208_s11 = scalar_lea.vmem %s601_s3, %s456_s5 }
  0x11   : > { %v210_v9 = vld [vmem:[%s198_s8] sm:$0xff]  ;;  %v212_v10 = vld [vmem:[%s198_s8 + $0x10] sm:$0xff]  ;;  %v211_v11 = vld [vmem:[%s198_s8 + $0x8] sm:$0xff] }
  0x12   : > { %v213_v12 = vld [vmem:[%s198_s8 + $0x18] sm:$0xff]  ;;  %v218_v13 = vadd.f32 %v212_v10, %v210_v9  ;;  %v214_v14 = vld [vmem:[%s198_s8 + $0x20] sm:$0xff]  ;;  %v215_v16 = vld [vmem:[%s198_s8 + $0x28] sm:$0xff] }
  0x13   : > { %v227_v15 = vadd.f32 %v213_v12, %v211_v11  ;;  %v216_v18 = vld [vmem:[%s198_s8 + $0x30] sm:$0xff]  ;;  %v217_v20 = vld [vmem:[%s198_s8 + $0x38] sm:$0xff] }
  0x14   : > { %339 = vperm.xlu1 %484, %v321_v7   ;;  %334 = vperm.xlu0 %483, %v320_v8   ;;  %v219_v17 = vadd.f32 %v218_v13, %v214_v14 }
  0x15   : > { %v228_v19 = vadd.f32 %v227_v15, %v215_v16 }
  0x16   : > { %v220_v21 = vadd.f32 %v219_v17, %v216_v18 }
  0x17   : > { %v229_v22 = vadd.f32 %v228_v19, %v217_v20 }
  0x18   : > { %v221_v23 = vrot.slane %v220_v21, 4 }
  0x19   : > { %v230_v24 = vrot.slane %v229_v22, 4 }
  0x1a   : > { %v222_v25 = vadd.f32 %v221_v23, %v220_v21 }
  0x1b   : > { %v231_v26 = vadd.f32 %v230_v24, %v229_v22 }
  0x1c   : > { %v223_v27 = vrot.slane %v222_v25, 2 }
  0x1d   : > { %v232_v28 = vrot.slane %v231_v26, 2 }
  0x1e   : > { %v224_v29 = vadd.f32 %v223_v27, %v222_v25 }
  0x1f   : > { %v233_v30 = vadd.f32 %v232_v28, %v231_v26 }
  0x20   : > { %v225_v31 = vrot.slane %v224_v29, 1 }
  0x21   : > { %v234_v32 = vrot.slane %v233_v30, 1 }
  0x22   : > { %v226_v33 = vadd.f32 %v225_v31, %v224_v29 }
  0x23   : > { %v235_v34 = vadd.f32 %v234_v32, %v233_v30 }
  0x24   : > { %v236_v35 = vmul.f32 0.03125, %v226_v33 }
  0x25   : > { %v237_v36 = vmul.f32 0.03125, %v235_v34 }
  0x26   : > { %v238_v37 = vsub.f32 %v210_v9, %v236_v35  ;;  %v240_v38 = vsub.f32 %v212_v10, %v236_v35  ;;  %v242_v41 = vsub.f32 %v214_v14, %v236_v35  ;;  %v244_v47 = vsub.f32 %v216_v18, %v236_v35 }
  0x27   : > { %v239_v39 = vsub.f32 %v211_v11, %v237_v36  ;;  %v241_v40 = vsub.f32 %v213_v12, %v237_v36  ;;  %v243_v44 = vsub.f32 %v215_v16, %v237_v36  ;;  %v245_v50 = vsub.f32 %v217_v20, %v237_v36 }
  0x28   : > { %v246_v42 = vmul.f32 %v238_v37, %v238_v37  ;;  %v248_v43 = vmul.f32 %v240_v38, %v240_v38  ;;  %v250_v48 = vmul.f32 %v242_v41, %v242_v41  ;;  %v252_v53 = vmul.f32 %v244_v47, %v244_v47 }
  0x29   : > { %v247_v45 = vmul.f32 %v239_v39, %v239_v39  ;;  %v249_v46 = vmul.f32 %v241_v40, %v241_v40  ;;  %v251_v51 = vmul.f32 %v243_v44, %v243_v44  ;;  %v253_v55 = vmul.f32 %v245_v50, %v245_v50 }
  0x2a   : > { %v254_v49 = vadd.f32 %v248_v43, %v246_v42 }
  0x2b   : > { %v263_v52 = vadd.f32 %v249_v46, %v247_v45 }
  0x2c   : > { %v255_v54 = vadd.f32 %v254_v49, %v250_v48 }
  0x2d   : > { %v264_v56 = vadd.f32 %v263_v52, %v251_v51 }
  0x2e   : > { %v256_v57 = vadd.f32 %v255_v54, %v252_v53 }
  0x2f   : > { %v265_v58 = vadd.f32 %v264_v56, %v253_v55 }
  0x30   : > { %v257_v59 = vrot.slane %v256_v57, 4 }
  0x31   : > { %v266_v60 = vrot.slane %v265_v58, 4 }
  0x32   : > { %v258_v61 = vadd.f32 %v257_v59, %v256_v57 }
  0x33   : > { %v267_v62 = vadd.f32 %v266_v60, %v265_v58 }
  0x34   : > { %v259_v63 = vrot.slane %v258_v61, 2 }
  0x35   : > { %v268_v0 = vrot.slane %v267_v62, 2 }
  0x36   : > { %v260_v1 = vadd.f32 %v259_v63, %v258_v61 }
  0x37   : > { %v269_v2 = vadd.f32 %v268_v0, %v267_v62 }
  0x38   : > { %v261_v3 = vrot.slane %v260_v1, 1 }
  0x39   : > { %v270_v4 = vrot.slane %v269_v2, 1 }
  0x3a   : > { %v262_v5 = vadd.f32 %v261_v3, %v260_v1 }
  0x3b   : > { %v271_v6 = vadd.f32 %v270_v4, %v269_v2 }
  0x3c   : > { %v272_v7 = vmul.f32 0.03125, %v262_v5 }
  0x3d   : > { %v273_v8 = vmul.f32 0.03125, %v271_v6 }
  0x3e   : > { %v274_v9 = vadd.f32 1e-06, %v272_v7 }
  0x3f   : > { %v275_v10 = vadd.f32 1e-06, %v273_v8 }
  0x40   : > { %485 = vrsqrt.f32 %v274_v9 }
  0x41   : > { %487 = vrsqrt.f32 %v275_v10 }
  0x4a   : > { %v486_v11 = vpop.eup %485 }
  0x4b   : > { %v488_v12 = vpop.eup %487  ;;  %v278_v15 = vmul.f32 %v486_v11, %v238_v37  ;;  %v280_v17 = vmul.f32 %v486_v11, %v240_v38  ;;  %v282_v21 = vmul.f32 %v486_v11, %v242_v41  ;;  %v284_v23 = vmul.f32 %v486_v11, %v244_v47 }
  0x4c   : > { %v279_v16 = vmul.f32 %v488_v12, %v239_v39  ;;  %v281_v18 = vmul.f32 %v488_v12, %v241_v40  ;;  %v283_v22 = vmul.f32 %v488_v12, %v243_v44  ;;  %v285_v24 = vmul.f32 %v488_v12, %v245_v50 }
  0x87   : > { %v303_v13 = vpop.permute.xlu1 %302  ;;  %v293_v14 = vpop.permute.xlu0 %292 }
  0x88   : > { %v310_v25 = vmul.f32 %v293_v14, %v278_v15  ;;  %v311_v26 = vmul.f32 %v293_v14, %v279_v16  ;;  %v314_v35 = vmul.f32 %v303_v13, %v282_v21  ;;  %v315_v36 = vmul.f32 %v303_v13, %v283_v22 }
  0x8b   : > { %v308_v19 = vpop.permute.xlu1 %307  ;;  %v298_v20 = vpop.permute.xlu0 %297 }
  0x8c   : > { %v312_v27 = vmul.f32 %v298_v20, %v280_v17  ;;  %v313_v28 = vmul.f32 %v298_v20, %v281_v18  ;;  %v316_v37 = vmul.f32 %v308_v19, %v284_v23  ;;  %v317_v38 = vmul.f32 %v308_v19, %v285_v24 }
  0x8f   : > { %v330_v29 = vpop.permute.xlu1 %329  ;;  %v325_v30 = vpop.permute.xlu0 %324 }
  0x90   : > { %v344_v31 = vadd.f32 %v330_v29, %v312_v27  ;;  %v345_v32 = vadd.f32 %v330_v29, %v313_v28  ;;  %v342_v33 = vadd.f32 %v325_v30, %v310_v25  ;;  %v343_v34 = vadd.f32 %v325_v30, %v311_v26 }
  0x92   : > { %352 = vst [vmem:[%s208_s11 + $0x10] sm:$0xff] %v344_v31  ;;  %353 = vst [vmem:[%s208_s11 + $0x18] sm:$0xff] %v345_v32 }
  0x93   : > { %350 = vst [vmem:[%s208_s11] sm:$0xff] %v342_v33  ;;  %351 = vst [vmem:[%s208_s11 + $0x8] sm:$0xff] %v343_v34  ;;  %v340_v39 = vpop.permute.xlu1 %339  ;;  %v335_v40 = vpop.permute.xlu0 %334 }
  0x94   : > { %v348_v41 = vadd.f32 %v340_v39, %v316_v37  ;;  %v349_v42 = vadd.f32 %v340_v39, %v317_v38  ;;  %v346_v43 = vadd.f32 %v335_v40, %v314_v35  ;;  %v347_v44 = vadd.f32 %v335_v40, %v315_v36 }
  0x96   : > { %356 = vst [vmem:[%s208_s11 + $0x30] sm:$0xff] %v348_v41  ;;  %357 = vst [vmem:[%s208_s11 + $0x38] sm:$0xff] %v349_v42 }
  0x97   : > { %354 = vst [vmem:[%s208_s11 + $0x20] sm:$0xff] %v346_v43  ;;  %355 = vst [vmem:[%s208_s11 + $0x28] sm:$0xff] %v347_v44 }
  0x98 PF: > { %s13_s14 = sadd.s32 1, %s511_s14   ;;  %s602_s12 = smov %s507_s13 }
  0x99   : > { %p10_p5 = scmp.ge.s32.totalorder %s13_s14, 4   ;;  %s603_s13 = smov %s605_s15 }
  0x9b   :  { %12 = sbr.rel (!%p10_p5) target bundleno = 2 (0x2), region = 62 }

</bundles_post_ra>
